<compile_context>
chip_gen: v6e
topology: v6e:2x2x1
jax: 0.10.0
libtpu: 0.0.40
codegen_flags: <defaults>
</compile_context>

<pallas_src>
import functools

import jax
import jax.numpy as jnp
from jax import lax
from jax.experimental import pallas as pl
from jax.experimental.pallas import tpu as pltpu

_EPSILON = 0.0                    # matches WrightESRLoss.__init__
_LANES = 128
_TILE_BYTES = 4 * 1024 * 1024     # per-input, per-buffer tile target (~4 MiB)
_CHUNK_ROWS = 512                 # sub-chunk rows inside each tile
_VMEM_LIMIT = 40 * 1024 * 1024    # explicit scoped-VMEM budget (all generations)


def _esr_kernel(o_ref, t_ref, part_ref, *, steps, num_blocks, tile_rows,
                chunk_rows, last_rows, n_parallel):
    p = pl.program_id(0)
    j = pl.program_id(1)
    gb = p * steps + j            # global row-block index

    @pl.when(j == 0)
    def _init():
        part_ref[...] = jnp.zeros_like(part_ref)

    def chunk_sums(r0, nr):
        # nr is static and a multiple of 8, so the (nr//8, 8, 128) fold is a
        # plain vector-add reduction (no XLU, no mask).
        o = o_ref[pl.ds(r0, nr), :].astype(jnp.float32)
        t = t_ref[pl.ds(r0, nr), :].astype(jnp.float32)
        d = t - o
        sq = jnp.sum((d * d).reshape(-1, 8, _LANES), axis=0)
        en = jnp.sum((t * t).reshape(-1, 8, _LANES), axis=0)
        return sq, en

    def accumulate(n_valid):      # n_valid: static row count, multiple of 8
        n_full = n_valid // chunk_rows
        rem_rows = n_valid % chunk_rows
        sq_acc = jnp.zeros((8, _LANES), jnp.float32)
        en_acc = jnp.zeros((8, _LANES), jnp.float32)
        if n_full > 0:
            def body(c, carry):
                sa, ea = carry
                r0 = pl.multiple_of(c * chunk_rows, chunk_rows)
                sq, en = chunk_sums(r0, chunk_rows)
                return sa + sq, ea + en
            sq_acc, en_acc = lax.fori_loop(0, n_full, body, (sq_acc, en_acc),
                                           unroll=True)
        if rem_rows:
            sq, en = chunk_sums(n_full * chunk_rows, rem_rows)
            sq_acc = sq_acc + sq
            en_acc = en_acc + en
        part_ref[0, 0, :, :] += sq_acc
        part_ref[0, 1, :, :] += en_acc

    last = num_blocks - 1
    all_steps_full = (last_rows == tile_rows) and (n_parallel * steps == num_blocks)

    if all_steps_full:
        # Hot path: every (p, j) step is a full, valid block -- no branches.
        accumulate(tile_rows)
    else:
        @pl.when(gb < last)
        def _full():
            accumulate(tile_rows)

        @pl.when(gb == last)
        def _last():
            # Statically sliced partial last block (valid rows are a multiple
            # of 8); padded/overhang steps (gb > last) accumulate nothing.
            accumulate(last_rows)


def wright_esr_loss(output: jax.Array, target: jax.Array) -> jax.Array:
    assert output.shape == target.shape, "output/target shape mismatch"
    assert output.dtype == target.dtype, "output/target dtype mismatch"
    n_elems = output.size
    assert n_elems > 0, "empty input"

    itemsize = jnp.dtype(output.dtype).itemsize
    sublane = max(8, 32 // itemsize)          # native sublane count for dtype
    pad_align = sublane * _LANES

    flat_o = output.reshape(-1)
    flat_t = target.reshape(-1)
    pad = (-n_elems) % pad_align
    if pad:
        # Rare unaligned path: one small zero-pad to the next native vreg tile.
        # Zeros are neutral for both sums; n_elems is the divisor below.
        flat_o = jnp.pad(flat_o, (0, pad))
        flat_t = jnp.pad(flat_t, (0, pad))

    rows = (n_elems + pad) // _LANES
    # Zero-copy reshape (contiguous, default layout) in the aligned case.
    slab_o = flat_o.reshape(rows, _LANES)
    slab_t = flat_t.reshape(rows, _LANES)

    # ~4 MiB per input per buffer; rounded to a multiple of the chunk size.
    tile_rows_target = _TILE_BYTES // (_LANES * itemsize)
    tile_rows_target = max(sublane, (tile_rows_target // _CHUNK_ROWS) * _CHUNK_ROWS)
    tile_rows = min(tile_rows_target, rows)   # == rows (full dim) for small inputs

    num_blocks = pl.cdiv(rows, tile_rows)
    n_parallel = 2 if num_blocks >= 2 else 1      # megacore split (v7x)
    steps = pl.cdiv(num_blocks, n_parallel)

    if tile_rows % _CHUNK_ROWS == 0:
        chunk_rows = max(_CHUNK_ROWS, tile_rows // 16)
    else:
        chunk_rows = tile_rows
    last_rows = (rows % tile_rows) or tile_rows   # static, multiple of 8

    kernel = functools.partial(
        _esr_kernel, steps=steps, num_blocks=num_blocks, tile_rows=tile_rows,
        chunk_rows=chunk_rows, last_rows=last_rows, n_parallel=n_parallel)

    def in_map(p, j):
        # Clamp the overhang step of the parallel split onto the last block
        # (its accumulation is skipped inside the kernel).
        return (jnp.minimum(p * steps + j, num_blocks - 1), 0)

    parts = pl.pallas_call(
        kernel,
        out_shape=jax.ShapeDtypeStruct((n_parallel, 2, 8, _LANES), jnp.float32),
        grid_spec=pltpu.PrefetchScalarGridSpec(
            num_scalar_prefetch=0,
            grid=(n_parallel, steps),
            in_specs=[
                pl.BlockSpec((tile_rows, _LANES), in_map),
                pl.BlockSpec((tile_rows, _LANES), in_map),
            ],
            out_specs=pl.BlockSpec((1, 2, 8, _LANES),
                                   lambda p, j: (p, 0, 0, 0)),
        ),
        compiler_params=pltpu.CompilerParams(
            dimension_semantics=("parallel", "arbitrary"),
            vmem_limit_bytes=_VMEM_LIMIT,
        ),
    )(slab_o, slab_t)

    # Tiny JAX epilogue: combine per-core partial sums and form the loss.
    sums = jnp.sum(parts, axis=(0, 2, 3))     # (2,) -> [sum((t-o)^2), sum(t^2)]
    n = jnp.float32(n_elems)
    # NOTE: epsilon = 0.0 (PyTorch default) -> all-zero target yields inf/nan,
    # matching the reference module's behavior.
    return (sums[0] / n) / (sums[1] / n + jnp.float32(_EPSILON))


def _reference(output, target):
    loss = jnp.mean(jnp.square(target - output))
    energy = jnp.mean(jnp.square(target)) + _EPSILON
    return loss / energy


if __name__ == "__main__":
    key = jax.random.PRNGKey(0)
    k1, k2 = jax.random.split(key)
    # Small NCHW-like shape consistent with a regression loss over a signal.
    x_shape = (2, 4, 16, 16)
    output = jax.random.normal(k1, x_shape, dtype=jnp.float32)
    target = jax.random.normal(k2, x_shape, dtype=jnp.float32)

    loss = jax.block_until_ready(wright_esr_loss(output, target))
    ref = _reference(output, target)
    assert jnp.allclose(loss, ref, rtol=1e-5, atol=1e-6), (loss, ref)
    print("KERNEL_OK")
</pallas_src>

<mosaic_0001>
module attributes {stable_mosaic.version = 11 : i64} {
  func.func @_esr_kernel(%arg0: i32, %arg1: i32, %arg2: memref<16x128xf32, #tpu.memory_space<vmem>>, %arg3: memref<16x128xf32, #tpu.memory_space<vmem>>, %arg4: memref<1x2x8x128xf32, #tpu.memory_space<vmem>>) attributes {dimension_semantics = [#tpu.dimension_semantics<parallel>, #tpu.dimension_semantics<arbitrary>], iteration_bounds = array<i64: 1, 1>, scalar_prefetch = 0 : i64, scratch_operands = 0 : i64, tpu.core_type = #tpu.core_type<tc>, window_params = [{transform_indices = @transform_0, window_bounds = array<i64: 16, 128>}, {transform_indices = @transform_1, window_bounds = array<i64: 16, 128>}, {transform_indices = @transform_2, window_bounds = array<i64: 1, 2, 8, 128>}]} {
    %c0_i32 = arith.constant 0 : i32
    %0 = arith.cmpi eq, %arg1, %c0_i32 : i32
    %1 = arith.extui %0 : i1 to i32
    %c0_i32_0 = arith.constant 0 : i32
    %2 = arith.cmpi ne, %1, %c0_i32_0 : i32
    scf.if %2 {
      %cst_21 = arith.constant 0.000000e+00 : f32
      %32 = vector.broadcast %cst_21 : f32 to vector<1x2x8x128xf32>
      %c0_22 = arith.constant 0 : index
      %c0_23 = arith.constant 0 : index
      %c0_24 = arith.constant 0 : index
      %c0_25 = arith.constant 0 : index
      %33 = vector.load %arg4[%c0_22, %c0_23, %c0_24, %c0_25] : memref<1x2x8x128xf32, #tpu.memory_space<vmem>>, vector<1x2x8x128xf32>
      tpu.vector_store %arg4[%c0_22, %c0_23, %c0_24, %c0_25], %32 {strides = array<i32>} : memref<1x2x8x128xf32, #tpu.memory_space<vmem>>, vector<1x2x8x128xf32>,
    } else {
    }
    %cst = arith.constant 0.000000e+00 : f32
    %3 = vector.broadcast %cst : f32 to vector<8x128xf32>
    %cst_1 = arith.constant 0.000000e+00 : f32
    %4 = vector.broadcast %cst_1 : f32 to vector<8x128xf32>
    %c0_i32_2 = arith.constant 0 : i32
    %c16_i32 = arith.constant 16 : i32
    %5 = arith.muli %c0_i32_2, %c16_i32 : i32
    %6 = tpu.assume_multiple %5, 16 : i32
    %7 = arith.index_cast %6 : i32 to index
    %c0 = arith.constant 0 : index
    %8 = vector.load %arg2[%7, %c0] : memref<16x128xf32, #tpu.memory_space<vmem>>, vector<16x128xf32>
    %9 = arith.index_cast %6 : i32 to index
    %c0_3 = arith.constant 0 : index
    %10 = vector.load %arg3[%9, %c0_3] : memref<16x128xf32, #tpu.memory_space<vmem>>, vector<16x128xf32>
    %11 = arith.subf %10, %8 : vector<16x128xf32>
    %12 = arith.mulf %11, %11 : vector<16x128xf32>
    %13 = vector.shape_cast %12 : vector<16x128xf32> to vector<2x8x128xf32>
    %cst_4 = arith.constant dense<0.000000e+00> : vector<8x128xf32>
    %14 = vector.multi_reduction <add>, %13, %cst_4 [0] : vector<2x8x128xf32> to vector<8x128xf32>
    %15 = arith.mulf %10, %10 : vector<16x128xf32>
    %16 = vector.shape_cast %15 : vector<16x128xf32> to vector<2x8x128xf32>
    %cst_5 = arith.constant dense<0.000000e+00> : vector<8x128xf32>
    %17 = vector.multi_reduction <add>, %16, %cst_5 [0] : vector<2x8x128xf32> to vector<8x128xf32>
    %18 = arith.addf %3, %14 : vector<8x128xf32>
    %19 = arith.addf %4, %17 : vector<8x128xf32>
    %c1_i32 = arith.constant 1 : i32
    %c0_6 = arith.constant 0 : index
    %c0_7 = arith.constant 0 : index
    %c0_8 = arith.constant 0 : index
    %c0_9 = arith.constant 0 : index
    %20 = vector.load %arg4[%c0_6, %c0_7, %c0_8, %c0_9] : memref<1x2x8x128xf32, #tpu.memory_space<vmem>>, vector<1x1x8x128xf32>
    %21 = vector.shape_cast %20 : vector<1x1x8x128xf32> to vector<8x128xf32>
    %22 = arith.addf %21, %18 : vector<8x128xf32>
    %c0_10 = arith.constant 0 : index
    %c0_11 = arith.constant 0 : index
    %c0_12 = arith.constant 0 : index
    %c0_13 = arith.constant 0 : index
    %23 = vector.load %arg4[%c0_10, %c0_11, %c0_12, %c0_13] : memref<1x2x8x128xf32, #tpu.memory_space<vmem>>, vector<1x1x8x128xf32>
    %24 = vector.shape_cast %23 : vector<1x1x8x128xf32> to vector<8x128xf32>
    %25 = vector.shape_cast %22 : vector<8x128xf32> to vector<1x1x8x128xf32>
    tpu.vector_store %arg4[%c0_10, %c0_11, %c0_12, %c0_13], %25 {strides = array<i32>} : memref<1x2x8x128xf32, #tpu.memory_space<vmem>>, vector<1x1x8x128xf32>,
    %c0_14 = arith.constant 0 : index
    %c1 = arith.constant 1 : index
    %c0_15 = arith.constant 0 : index
    %c0_16 = arith.constant 0 : index
    %26 = vector.load %arg4[%c0_14, %c1, %c0_15, %c0_16] : memref<1x2x8x128xf32, #tpu.memory_space<vmem>>, vector<1x1x8x128xf32>
    %27 = vector.shape_cast %26 : vector<1x1x8x128xf32> to vector<8x128xf32>
    %28 = arith.addf %27, %19 : vector<8x128xf32>
    %c0_17 = arith.constant 0 : index
    %c1_18 = arith.constant 1 : index
    %c0_19 = arith.constant 0 : index
    %c0_20 = arith.constant 0 : index
    %29 = vector.load %arg4[%c0_17, %c1_18, %c0_19, %c0_20] : memref<1x2x8x128xf32, #tpu.memory_space<vmem>>, vector<1x1x8x128xf32>
    %30 = vector.shape_cast %29 : vector<1x1x8x128xf32> to vector<8x128xf32>
    %31 = vector.shape_cast %28 : vector<8x128xf32> to vector<1x1x8x128xf32>
    tpu.vector_store %arg4[%c0_17, %c1_18, %c0_19, %c0_20], %31 {strides = array<i32>} : memref<1x2x8x128xf32, #tpu.memory_space<vmem>>, vector<1x1x8x128xf32>,
    return
  }
  func.func @transform_0(%arg0: i32, %arg1: i32) -> (i32, i32) {
    %c1_i32 = arith.constant 1 : i32
    %0 = arith.muli %arg0, %c1_i32 : i32
    %1 = arith.addi %0, %arg1 : i32
    %c0_i32 = arith.constant 0 : i32
    %2 = arith.minsi %1, %c0_i32 : i32
    %c0_i32_0 = arith.constant 0 : i32
    %c0_i32_1 = arith.constant 0 : i32
    return %2, %c0_i32_0 : i32, i32
  }
  func.func @transform_1(%arg0: i32, %arg1: i32) -> (i32, i32) {
    %c1_i32 = arith.constant 1 : i32
    %0 = arith.muli %arg0, %c1_i32 : i32
    %1 = arith.addi %0, %arg1 : i32
    %c0_i32 = arith.constant 0 : i32
    %2 = arith.minsi %1, %c0_i32 : i32
    %c0_i32_0 = arith.constant 0 : i32
    %c0_i32_1 = arith.constant 0 : i32
    return %2, %c0_i32_0 : i32, i32
  }
  func.func @transform_2(%arg0: i32, %arg1: i32) -> (i32, i32, i32, i32) {
    %c0_i32 = arith.constant 0 : i32
    %c0_i32_0 = arith.constant 0 : i32
    %c0_i32_1 = arith.constant 0 : i32
    %c0_i32_2 = arith.constant 0 : i32
    return %arg0, %c0_i32, %c0_i32_0, %c0_i32_1 : i32, i32, i32, i32
  }
}

</mosaic_0001>

<bundles_post_ra>
// kernel: tpu_custom_call.1
= control target key start
LH: loop header
LB: loop body
LE: loop exit
PB: predicated region body
PF: predicated region fallthrough
CT: control target
= control target key end

     0   :  { %7 = vsyncpa [#allocation3], 0  ;;  %s219_s0 = inlined_call_operand.hbm [shape: f32[16,128], index: 0, kind: input, shape index: {}]   ;;  %s220_s1 = inlined_call_operand.hbm [shape: f32[16,128], index: 1, kind: input, shape index: {}]   ;;  %s221_s2 = inlined_call_operand.hbm [shape: f32[1,2,8,128], index: 2, kind: output, shape index: {}]  }
   0x1   :  { %8 = vsyncpa [#allocation6], 0 }
   0x2   :  { %9 = vsyncpa [#allocation4], 0  ;;  %s181_s9 = smov [#allocation2]  }
   0x3   :  { %s21_s10 = sshll.u32 %s181_s9, 4  ;;  %s22_s10 = int_to_ptr.vmem [resolvable:$true] %s21_s10 }
   0x4   :  { %s123_s11 = scalar_lea.vmem %s22_s10, 256  ;;  %p128_p1 = scmp.lt.s32.totalorder %s22_s10, %s22_s10 }
   0x5   :  { %p124_p0 = scmp.ne.s32.totalorder %s22_s10, %s123_s11  ;;  %p129_p2 = scmp.lt.s32.totalorder %s123_s11, %s123_s11 }
   0x7   :  { %p130_p3 = por %p129_p2, %p128_p1 }
   0x9   :  { %p131_p4 = pnand %p130_p3, %p124_p0 }
   0xb   :  { %134 = shalt.err (!%p131_p4)
}
   0xc   :  { %s182_s12 = smov 128   ;;  %s183_s13 = smov 8  }
   0xd   :  { %27 = dma.hbm_to_vmem [thread:$0]  %s219_s0, 256, %s22_s10, [#allocation3], %s182_s12, %s182_s12, %s183_s13  }
   0xe   :  { %s184_s16 = smov [#allocation5]  }
   0xf   :  { %s39_s17 = sshll.u32 %s184_s16, 4  ;;  %s40_s17 = int_to_ptr.vmem [resolvable:$true] %s39_s17 }
  0x10   :  { %s143_s18 = scalar_lea.vmem %s40_s17, 256  ;;  %p148_p6 = scmp.lt.s32.totalorder %s40_s17, %s40_s17 }
  0x11   :  { %p144_p5 = scmp.ne.s32.totalorder %s40_s17, %s143_s18  ;;  %p149_p7 = scmp.lt.s32.totalorder %s143_s18, %s143_s18 }
  0x13   :  { %p150_p8 = por %p149_p7, %p148_p6 }
  0x15   :  { %p151_p9 = pnand %p150_p8, %p144_p5 }
  0x17   :  { %154 = shalt.err (!%p151_p9)
}
  0x18   :  { %45 = dma.hbm_to_vmem [thread:$0]  %s220_s1, 256, %s40_s17, [#allocation6], %s182_s12, %s182_s12, %s183_s13  }
  0x19   :  { %175 = dma.done.wait [#allocation3], 256  }
  0x1a   :  { %176 = vsyncadd [#allocation3], 4294967040 }
  0x1b   :  { %177 = dma.done.wait [#allocation6], 256  }
  0x1c   :  { %178 = vsyncadd [#allocation6], 4294967040  ;;  %v66_v0 = vld [vmem:[#allocation2] sm:$0xff]  ;;  %v67_v1 = vld [vmem:[#allocation2 + $0x8] sm:$0xff]  ;;  %s185_s0 = smov [#allocation7]  }
  0x1d   :  { %v68_v2 = vld [vmem:[#allocation5] sm:$0xff]  ;;  %v69_v3 = vld [vmem:[#allocation5 + $0x8] sm:$0xff]  ;;  %s92_s21 = sshll.u32 %s185_s0, 4  ;;  %s93_s21 = int_to_ptr.vmem [resolvable:$true] %s92_s21 }
  0x1e   :  { %v70_v4 = vsub.f32 %v68_v2, %v66_v0  ;;  %v75_v5 = vmul.f32 %v68_v2, %v68_v2  ;;  %v71_v6 = vsub.f32 %v69_v3, %v67_v1  ;;  %v76_v7 = vmul.f32 %v69_v3, %v69_v3  ;;  %s155_s1 = scalar_lea.vmem %s93_s21, 256  ;;  %p160_p11 = scmp.lt.s32.totalorder %s93_s21, %s93_s21 }
  0x1f   :  { %p156_p10 = scmp.ne.s32.totalorder %s93_s21, %s155_s1  ;;  %p161_p12 = scmp.lt.s32.totalorder %s155_s1, %s155_s1 }
  0x20   :  { %v72_v8 = vmul.f32 %v70_v4, %v70_v4  ;;  %v73_v9 = vmul.f32 %v71_v6, %v71_v6  ;;  %v77_v10 = vadd.f32 %v76_v7, %v75_v5 }
  0x21   :  { %p162_p13 = por %p161_p12, %p160_p11 }
  0x22   :  { %v74_v11 = vadd.f32 %v73_v9, %v72_v8  ;;  %86 = vst [vmem:[#allocation7 + $0x8] sm:$0xff] %v77_v10 }
  0x23   :  { %p163_p0 = pnand %p162_p13, %p156_p10 }
  0x24   :  { %82 = vst [vmem:[#allocation7] sm:$0xff] %v74_v11 }
  0x25   :  { %166 = shalt.err (!%p163_p0)
}
  0x26   :  { %98 = dma.vmem_to_hbm [thread:$0]  %s93_s21, 256, %s221_s2, [#allocation4], %s182_s12, %s182_s12, %s183_s13  }
  0x27   :  { %179 = dma.done.wait [#allocation4], 256  }
  0x28   :  { %180 = vsyncadd [#allocation4], 4294967040 }
  0x29   :  { %102 = vsyncpa [#allocation3], 1 }
  0x2a   :  { %103 = vsyncpa [#allocation6], 1 }
  0x2b   :  { %104 = vsyncpa [#allocation4], 1 }

</bundles_post_ra>
